<compile_context>
chip_gen: v7x
topology: tpu7x:2x2x1
jax: 0.10.0
libtpu: 0.0.40
codegen_flags: <defaults>
</compile_context>

<pallas_src>
import functools

import jax
import jax.numpy as jnp
from jax import lax
from jax.experimental import pallas as pl
from jax.experimental.pallas import tpu as pltpu

_LANE = 128
_NEG_INF = -1e30          # finite "-inf" bias for padded logit columns


def _round_up(x, m):
    return (x + m - 1) // m * m


def _vmem_budget():
    """Generation-aware (budget, limit) in bytes."""
    try:
        cap = int(pltpu.get_tpu_info().vmem_capacity_bytes)
    except Exception:
        cap = 64 * 1024 * 1024                      # conservative v7x-sized fallback
    limit = min((cap * 3) // 4, 96 * 1024 * 1024)   # ~96 MiB v5e/v6e, ~48 MiB v7x
    budget = (limit * 3) // 4                       # headroom for Mosaic internals
    return budget, limit


def _row_multiple(dtype):
    # Sub-32-bit dtypes pack along sublanes: f32 -> 8, bf16 -> 16, int8/fp8 -> 32.
    return 8 * max(1, 4 // jnp.dtype(dtype).itemsize)


def _pick_tb(B, block_b, row_mult, resident_bytes, per_row_bytes, budget):
    """Largest batch tile (multiple of row_mult) fitting the VMEM budget."""
    headroom = max(budget - resident_bytes, per_row_bytes * row_mult)
    tb = min(block_b, headroom // per_row_bytes, _round_up(B, row_mult))
    tb = max(row_mult, (tb // row_mult) * row_mult)
    # Keep >= 4 grid steps for big batches: v7x 2-TC sharding + input/output overlap.
    if B >= 4 * row_mult:
        tb = min(tb, max(row_mult, _round_up(pl.cdiv(B, 4), row_mult)))
    return tb


# ---------------------------------------------------------------------------
# Kernels
# ---------------------------------------------------------------------------
def _resident_kernel(x_ref, w_ref, b_ref, o_ref, *, out_dim, op_dtype):
    # x_ref: (tb, in_dim)       streamed, native dtype
    # w_ref: (in_dim, out_pad)  resident, (K, N) layout, padded cols are 0
    # b_ref: (1, out_pad)       f32, padded cols = -1e30 (softmax ignores them)
    # o_ref: (tb, out_dim)      true-size output block
    x = x_ref[...]
    if x.dtype != op_dtype:
        x = x.astype(op_dtype)                      # in-kernel cast, hidden under DMA
    logits = jnp.dot(x, w_ref[...], preferred_element_type=jnp.float32) + b_ref[...]
    m = jnp.max(logits, axis=-1, keepdims=True)
    e = jnp.exp(logits - m)
    probs = e / jnp.sum(e, axis=-1, keepdims=True)  # exact division: rows sum to 1
    if out_dim != probs.shape[-1]:
        probs = probs[:, :out_dim]
    o_ref[...] = probs.astype(o_ref.dtype)


def _ktiled_kernel(x_ref, w_ref, b_ref, o_ref, acc_ref, *,
                   in_dim, tk, out_dim, op_dtype, mask_k):
    # Grid = (batch tiles, K tiles); K is the reduction ("arbitrary") axis.
    k = pl.program_id(1)

    @pl.when(k == 0)
    def _():
        acc_ref[...] = jnp.zeros_like(acc_ref)

    x = x_ref[...]
    if mask_k:                                      # ragged last K block of x
        col = lax.broadcasted_iota(jnp.int32, x.shape, 1) + k * tk
        x = jnp.where(col < in_dim, x, jnp.zeros_like(x))
    if x.dtype != op_dtype:
        x = x.astype(op_dtype)
    acc_ref[...] += jnp.dot(x, w_ref[...], preferred_element_type=jnp.float32)

    @pl.when(k == pl.num_programs(1) - 1)
    def _():
        logits = acc_ref[...] + b_ref[...]
        m = jnp.max(logits, axis=-1, keepdims=True)
        e = jnp.exp(logits - m)
        probs = e / jnp.sum(e, axis=-1, keepdims=True)
        if out_dim != probs.shape[-1]:
            probs = probs[:, :out_dim]
        o_ref[...] = probs.astype(o_ref.dtype)


# ---------------------------------------------------------------------------
# Wrapper
# ---------------------------------------------------------------------------
def make_simple_classifier(weight, bias, *, operand_dtype=None, block_b=1024,
                           force_k_tiling=False):
    """Pad/cast/transpose the weights ONCE; return forward(x).

    weight: (out_dim, in_dim)  -- PyTorch nn.Linear layout
    bias:   (out_dim,)
    operand_dtype: matmul operand dtype (e.g. jnp.bfloat16 on v6e/v7x);
                   accumulation and softmax are always f32.
    """
    out_dim, in_dim = weight.shape
    op_dtype = jnp.dtype(operand_dtype) if operand_dtype is not None else jnp.dtype(weight.dtype)
    op_bytes = op_dtype.itemsize
    out_pad = _round_up(max(out_dim, _LANE), _LANE)   # lane-dense compute width
    budget, vmem_limit = _vmem_budget()

    # Residency check: the weight block is double-buffered by BlockSpec.
    w_resident = 2 * (in_dim * out_pad * op_bytes + out_pad * 4)
    per_row_est = 2 * (in_dim + out_dim) * 4 + 2 * out_pad * 4 + in_dim * op_bytes
    fits = w_resident + per_row_est * 8 <= budget
    use_k_tiling = (force_k_tiling or not fits) and in_dim >= _LANE

    bias_p = jnp.full((1, out_pad), _NEG_INF, jnp.float32)
    bias_p = bias_p.at[0, :out_dim].set(bias.astype(jnp.float32))

    if use_k_tiling:
        tk_cap = max(_LANE, (budget // (8 * out_pad * op_bytes)) // _LANE * _LANE)
        tk = max(_LANE, min(512, (in_dim // _LANE) * _LANE, tk_cap))
        k_pad = _round_up(in_dim, tk)
        w_p = jnp.zeros((k_pad, out_pad), op_dtype)
        w_p = w_p.at[:in_dim, :out_dim].set(weight.T.astype(op_dtype))
    else:
        tk = None
        k_pad = in_dim
        w_p = jnp.zeros((in_dim, out_pad), op_dtype)
        w_p = w_p.at[:, :out_dim].set(weight.T.astype(op_dtype))

    def forward(x):
        assert x.ndim == 2 and x.shape[1] == in_dim
        B = x.shape[0]
        out_dtype = x.dtype
        x_bytes = jnp.dtype(x.dtype).itemsize
        o_bytes = jnp.dtype(out_dtype).itemsize
        row_mult = _row_multiple(x.dtype)
        casting = op_dtype != jnp.dtype(x.dtype)

        if not use_k_tiling:
            resident = 2 * (in_dim * out_pad * op_bytes + out_pad * 4)
            per_row = (2 * (in_dim * x_bytes + out_dim * o_bytes)    # 2x-buffered x / out
                       + 2 * out_pad * 4                             # f32 logits + exp
                       + (in_dim * op_bytes if casting else 0))      # in-kernel cast copy
            tb = _pick_tb(B, block_b, row_mult, resident, per_row, budget)
            kernel = functools.partial(_resident_kernel, out_dim=out_dim, op_dtype=op_dtype)
            return pl.pallas_call(
                kernel,
                out_shape=jax.ShapeDtypeStruct((B, out_dim), out_dtype),
                grid_spec=pl.GridSpec(
                    grid=(pl.cdiv(B, tb),),                          # ragged last block OK
                    in_specs=[
                        pl.BlockSpec((tb, in_dim), lambda i: (i, 0)),        # streamed
                        pl.BlockSpec((in_dim, out_pad), lambda i: (0, 0)),   # resident
                        pl.BlockSpec((1, out_pad), lambda i: (0, 0)),        # resident
                    ],
                    out_specs=pl.BlockSpec((tb, out_dim), lambda i: (i, 0)),
                ),
                compiler_params=pltpu.CompilerParams(
                    dimension_semantics=("parallel",),
                    vmem_limit_bytes=vmem_limit,
                ),
            )(x, w_p, bias_p)

        # ---- tiled-K fallback: weight streamed over the reduction axis ------
        resident = 2 * (tk * out_pad * op_bytes + out_pad * 4)
        per_row = (2 * (tk * x_bytes + out_dim * o_bytes)
                   + 3 * out_pad * 4                                 # acc scratch + temps
                   + (tk * op_bytes if casting else 0))
        tb = _pick_tb(B, block_b, row_mult, resident, per_row, budget)
        kernel = functools.partial(
            _ktiled_kernel, in_dim=in_dim, tk=tk, out_dim=out_dim,
            op_dtype=op_dtype, mask_k=(k_pad != in_dim))
        return pl.pallas_call(
            kernel,
            out_shape=jax.ShapeDtypeStruct((B, out_dim), out_dtype),
            grid_spec=pltpu.PrefetchScalarGridSpec(
                num_scalar_prefetch=0,
                grid=(pl.cdiv(B, tb), k_pad // tk),
                in_specs=[
                    pl.BlockSpec((tb, tk), lambda i, k: (i, k)),
                    pl.BlockSpec((tk, out_pad), lambda i, k: (k, 0)),
                    pl.BlockSpec((1, out_pad), lambda i, k: (0, 0)),
                ],
                out_specs=pl.BlockSpec((tb, out_dim), lambda i, k: (i, 0)),
                scratch_shapes=[pltpu.VMEM((tb, out_pad), jnp.float32)],
            ),
            compiler_params=pltpu.CompilerParams(
                dimension_semantics=("parallel", "arbitrary"),
                vmem_limit_bytes=vmem_limit,
            ),
        )(x, w_p, bias_p)

    return forward


def simple_classifier(x, weight, bias, **kwargs):
    """One-shot convenience wrapper (prefer make_simple_classifier for reuse)."""
    return make_simple_classifier(weight, bias, **kwargs)(x)


if __name__ == "__main__":
    # Shapes consistent with the module: batch=8, in_dim=32, out_dim=16.
    B, in_dim, out_dim = 8, 32, 16

    key = jax.random.PRNGKey(0)
    kx, kw, kb, kx2, kw2, kb2 = jax.random.split(key, 6)

    # PyTorch nn.Linear-style uniform(-1/sqrt(in_dim), 1/sqrt(in_dim)) init.
    bound = 1.0 / (in_dim ** 0.5)
    weight = jax.random.uniform(kw, (out_dim, in_dim), jnp.float32, -bound, bound)
    bias = jax.random.uniform(kb, (out_dim,), jnp.float32, -bound, bound)
    x = jax.random.normal(kx, (B, in_dim), jnp.float32)

    ref = jax.nn.softmax(x @ weight.T + bias, axis=1)

    # f32 path (resident-weight kernel); weights prepared once via the factory.
    fwd = make_simple_classifier(weight, bias)
    out = jax.block_until_ready(fwd(x))
    assert out.shape == (B, out_dim)
    assert jnp.allclose(out, ref, atol=1e-3), "f32 path mismatch vs reference"
    assert jnp.allclose(jnp.sum(out, axis=1), 1.0, atol=1e-4), "f32 rows do not sum to 1"

    # bf16 MXU-operand path (x cast in-kernel; f32 accumulation + f32 softmax).
    out_bf16 = jax.block_until_ready(
        simple_classifier(x, weight, bias, operand_dtype=jnp.bfloat16))
    assert out_bf16.shape == (B, out_dim)
    assert jnp.allclose(out_bf16, ref, atol=2e-2), "bf16 path mismatch vs reference"
    assert jnp.allclose(jnp.sum(out_bf16, axis=1), 1.0, atol=1e-4)

    # Tiled-K fallback (forced): exercises ragged batch and ragged K blocks.
    B2, in_dim2, out_dim2 = 12, 200, 16
    bound2 = 1.0 / (in_dim2 ** 0.5)
    weight2 = jax.random.uniform(kw2, (out_dim2, in_dim2), jnp.float32, -bound2, bound2)
    bias2 = jax.random.uniform(kb2, (out_dim2,), jnp.float32, -bound2, bound2)
    x2 = jax.random.normal(kx2, (B2, in_dim2), jnp.float32)
    ref2 = jax.nn.softmax(x2 @ weight2.T + bias2, axis=1)
    out2 = jax.block_until_ready(
        simple_classifier(x2, weight2, bias2, force_k_tiling=True))
    assert out2.shape == (B2, out_dim2)
    assert jnp.allclose(out2, ref2, atol=1e-3), "tiled-K path mismatch vs reference"
    assert jnp.allclose(jnp.sum(out2, axis=1), 1.0, atol=1e-4)

    print("KERNEL_OK")
</pallas_src>

<mosaic_0001>
module attributes {stable_mosaic.version = 11 : i64} {
  func.func @_resident_kernel(%arg0: i32, %arg1: memref<8x32xf32, #tpu.memory_space<vmem>>, %arg2: memref<32x128xf32, #tpu.memory_space<vmem>>, %arg3: memref<1x128xf32, #tpu.memory_space<vmem>>, %arg4: memref<8x16xf32, #tpu.memory_space<vmem>>) attributes {dimension_semantics = [#tpu.dimension_semantics<parallel>], iteration_bounds = array<i64: 1>, scalar_prefetch = 0 : i64, scratch_operands = 0 : i64, tpu.core_type = #tpu.core_type<tc>, window_params = [{transform_indices = @transform_0, window_bounds = array<i64: 8, 32>}, {pipeline_mode = #tpu.pipeline_mode<synchronous>, transform_indices = @transform_1, window_bounds = array<i64: 32, 128>}, {pipeline_mode = #tpu.pipeline_mode<synchronous>, transform_indices = @transform_2, window_bounds = array<i64: 1, 128>}, {transform_indices = @transform_3, window_bounds = array<i64: 8, 16>}]} {
    %c0 = arith.constant 0 : index
    %c0_0 = arith.constant 0 : index
    %0 = vector.load %arg1[%c0, %c0_0] : memref<8x32xf32, #tpu.memory_space<vmem>>, vector<8x32xf32>
    %c0_1 = arith.constant 0 : index
    %c0_2 = arith.constant 0 : index
    %1 = vector.load %arg2[%c0_1, %c0_2] : memref<32x128xf32, #tpu.memory_space<vmem>>, vector<32x128xf32>
    %cst = arith.constant dense<0.000000e+00> : vector<8x128xf32>
    %2 = tpu.matmul %0, %1, %cst {dimension_numbers = #tpu.dot_dimension_numbers<[1], [0], [0], [1], [0, 0, 1, 1], [], []>} : vector<8x32xf32>, vector<32x128xf32>, vector<8x128xf32> -> vector<8x128xf32>
    %c0_3 = arith.constant 0 : index
    %c0_4 = arith.constant 0 : index
    %3 = vector.load %arg3[%c0_3, %c0_4] : memref<1x128xf32, #tpu.memory_space<vmem>>, vector<1x128xf32>
    %4 = vector.broadcast %3 : vector<1x128xf32> to vector<8x128xf32>
    %5 = arith.addf %2, %4 : vector<8x128xf32>
    %cst_5 = arith.constant dense<0xFF800000> : vector<8xf32>
    %6 = vector.multi_reduction <maximumf>, %5, %cst_5 [1] : vector<8x128xf32> to vector<8xf32>
    %7 = vector.shape_cast %6 : vector<8xf32> to vector<8x1xf32>
    %8 = vector.broadcast %7 : vector<8x1xf32> to vector<8x128xf32>
    %9 = arith.subf %5, %8 : vector<8x128xf32>
    %10 = math.exp %9 : vector<8x128xf32>
    %cst_6 = arith.constant dense<0.000000e+00> : vector<8xf32>
    %11 = vector.multi_reduction <add>, %10, %cst_6 [1] : vector<8x128xf32> to vector<8xf32>
    %12 = vector.shape_cast %11 : vector<8xf32> to vector<8x1xf32>
    %13 = vector.broadcast %12 : vector<8x1xf32> to vector<8x128xf32>
    %14 = arith.divf %10, %13 : vector<8x128xf32>
    %15 = vector.extract_strided_slice %14 {offsets = [0, 0], sizes = [8, 16], strides = [1, 1]} : vector<8x128xf32> to vector<8x16xf32>
    %c0_7 = arith.constant 0 : index
    %c0_8 = arith.constant 0 : index
    %16 = vector.load %arg4[%c0_7, %c0_8] : memref<8x16xf32, #tpu.memory_space<vmem>>, vector<8x16xf32>
    tpu.vector_store %arg4[%c0_7, %c0_8], %15 {strides = array<i32>} : memref<8x16xf32, #tpu.memory_space<vmem>>, vector<8x16xf32>,
    return
  }
  func.func @transform_0(%arg0: i32) -> (i32, i32) {
    %c0_i32 = arith.constant 0 : i32
    %c0_i32_0 = arith.constant 0 : i32
    return %arg0, %c0_i32 : i32, i32
  }
  func.func @transform_1(%arg0: i32) -> (i32, i32) {
    %c0_i32 = arith.constant 0 : i32
    %c0_i32_0 = arith.constant 0 : i32
    %c0_i32_1 = arith.constant 0 : i32
    return %c0_i32, %c0_i32_0 : i32, i32
  }
  func.func @transform_2(%arg0: i32) -> (i32, i32) {
    %c0_i32 = arith.constant 0 : i32
    %c0_i32_0 = arith.constant 0 : i32
    %c0_i32_1 = arith.constant 0 : i32
    return %c0_i32, %c0_i32_0 : i32, i32
  }
  func.func @transform_3(%arg0: i32) -> (i32, i32) {
    %c0_i32 = arith.constant 0 : i32
    %c0_i32_0 = arith.constant 0 : i32
    return %arg0, %c0_i32 : i32, i32
  }
}

</mosaic_0001>

<bundles_post_ra>
// kernel: tpu_custom_call.1
= control target key start
LH: loop header
LB: loop body
LE: loop exit
PB: predicated region body
PF: predicated region fallthrough
CT: control target
= control target key end

     0   :  { %8 = vsyncpa [#allocation3], 0  ;;  %s336_s0 = inlined_call_operand.hbm [shape: f32[8,32], index: 0, kind: input, shape index: {}]   ;;  %s337_s1 = inlined_call_operand.hbm [shape: f32[32,128], index: 1, kind: input, shape index: {}]   ;;  %s338_s2 = inlined_call_operand.vmem [shape: f32[1,128], index: 2, kind: input, shape index: {}]   ;;  %s339_s3 = inlined_call_operand.hbm [shape: f32[8,16], index: 3, kind: output, shape index: {}]  }
   0x1   :  { %9 = vsyncpa [#allocation6], 0 }
   0x2   :  { %10 = vsyncpa [#allocation4], 0  ;;  %s262_s12 = smov [#allocation2]   ;;  %s263_s14 = smov [#allocation5]  }
   0x3   :  { %s17_s13 = sshll.u32 %s262_s12, 4  ;;  %s26_s15 = sshll.u32 %s263_s14, 4  ;;  %s18_s13 = int_to_ptr.vmem [resolvable:$true] %s17_s13  ;;  %s290_s15 = int_to_ptr.vmem [resolvable:$true] %s26_s15 }
   0x4   :  { %s190_s18 = scalar_lea.hbm %s336_s0, 128 }
   0x5   :  { %p191_p0 = scmp.ne.s32.totalorder %s336_s0, %s190_s18  ;;  %p194_p1 = scmp.lt.u32.totalorder %s190_s18, %s336_s0 }
   0x7   :  { %p196_p2 = pnand %p194_p1, %p191_p0 }
   0x9   :  { %199 = shalt.err (!%p196_p2)
}
   0xa   :  { %s200_s23 = scalar_lea.vmem %s18_s13, 128  ;;  %p205_p4 = scmp.lt.s32.totalorder %s18_s13, %s18_s13 }
   0xb   :  { %p201_p3 = scmp.ne.s32.totalorder %s18_s13, %s200_s23  ;;  %p206_p5 = scmp.lt.s32.totalorder %s200_s23, %s200_s23 }
   0xd   :  { %p207_p6 = por %p206_p5, %p205_p4 }
   0xf   :  { %p208_p7 = pnand %p207_p6, %p201_p3 }
  0x11   :  { %211 = shalt.err (!%p208_p7)
}
  0x12   :  { %20 = dma.hbm_to_vmem [thread:$0]  %s336_s0, 128, %s18_s13, [#allocation3]  }
  0x13   :  { %s212_s28 = scalar_lea.hbm %s337_s1, 512 }
  0x14   :  { %p213_p8 = scmp.ne.s32.totalorder %s337_s1, %s212_s28  ;;  %p216_p9 = scmp.lt.u32.totalorder %s212_s28, %s337_s1 }
  0x16   :  { %p218_p10 = pnand %p216_p9, %p213_p8 }
  0x18   :  { %221 = shalt.err (!%p218_p10)
}
  0x19   :  { %s222_s6 = scalar_lea.vmem %s290_s15, 512  ;;  %p227_p12 = scmp.lt.s32.totalorder %s290_s15, %s290_s15 }
  0x1a   :  { %p223_p11 = scmp.ne.s32.totalorder %s290_s15, %s222_s6  ;;  %p228_p13 = scmp.lt.s32.totalorder %s222_s6, %s222_s6 }
  0x1c   :  { %p229_p0 = por %p228_p13, %p227_p12 }
  0x1e   :  { %p230_p1 = pnand %p229_p0, %p223_p11 }
  0x20   :  { %233 = shalt.err (!%p230_p1)
}
  0x21   :  { %s264_s0 = smov 128   ;;  %s265_s7 = smov 8  }
  0x22   :  { %32 = dma.hbm_to_vmem [thread:$0]  %s337_s1, 512, %s290_s15, [#allocation6], %s264_s0, %s264_s0, %s265_s7  }
  0x23   :  { %256 = dma.done.wait [#allocation3], 128  }
  0x24   :  { %257 = vsyncadd [#allocation3], 4294967168 }
  0x25   :  { %258 = dma.done.wait [#allocation6], 512  }
  0x26   :  { %259 = vsyncadd [#allocation6], 4294966784  ;;  %v266_v0 = vmov 0.0|0.0   ;;  %vm267_vm0 = vmmov 0   ;;  %v268_v1 = vmov 0.0   ;;  %v42_v2 = vld [vmem:[#allocation5] sm:$0xff] }
  0x27   :  { %172 = vmatprep.subr.bf16.mxu0 %v266_v0  ;;  %169 = vmatprep.mubr.msk.f32.mxu0 %vm267_vm0, %v268_v1  ;;  %v43_v3 = vld [vmem:[#allocation5 + $0x8] sm:$0xff]  ;;  %v44_v4 = vld [vmem:[#allocation5 + $0x10] sm:$0xff]  ;;  %v45_v6 = vld [vmem:[#allocation5 + $0x18] sm:$0xff]  ;;  %vm53_vm1 = vcmask 261120   ;;  %s269_s11 = smov [#allocation7]   ;;  %vm136_vm2 = vcmask 130048  }
  0x28   :  { %v173_v5 = vpack.c.bf16 %v43_v3, %v42_v2  ;;  %v176_v7 = vpack.c.bf16 %v45_v6, %v44_v4  ;;  %v41_v8 = vld [vmem:[#allocation2] sm:$0xff]  ;;  %s144_s12 = sshll.u32 %s269_s11, 4  ;;  %s145_s12 = int_to_ptr.vmem [resolvable:$true] %s144_s12 }
  0x29   :  { %v154_v9 = vld [vmem:[%s338_s2] ss:$0 sm:$0xff]  ;;  %s234_s2 = scalar_lea.vmem %s145_s12, 128  ;;  %p239_p3 = scmp.lt.s32.totalorder %s145_s12, %s145_s12 }
  0x2a   :  { %174 = vmatpush3.bf16.msra.mxu0 %v173_v5  ;;  %p235_p2 = scmp.ne.s32.totalorder %s145_s12, %s234_s2  ;;  %p240_p4 = scmp.lt.s32.totalorder %s234_s2, %s234_s2 }
  0x2b   :  { %175 = vmatprep.subr.bf16.mxu0 %v266_v0 }
  0x2c   :  { %p241_p5 = por %p240_p4, %p239_p3 }
  0x2e   :  { %177 = vmatpush3.bf16.msra.mxu0 %v176_v7  ;;  %p242_p6 = pnand %p241_p5, %p235_p2 }
  0x31   :  { %170 = vmatmul.mubr.msk.f32.vlgmr.msra.gmra.mrb[0].mxu0 %vm53_vm1, %v41_v8 }
 0x104   :  { %v123_v10 = vpop.f32.mrb[0].mxu0 }
 0x105   :  { %v124_v11 = vadd.f32 %v154_v9, %v123_v10  ;;  %v171_v12 = vpop.f32.mrb[1].mxu0 }
 0x107   :  { %127 = vmax.xlane.f32.xlu0 %v124_v11 }
 0x194   :  { %v128_v13 = vpop.xlane.xlu0 %127 }
 0x195   :  { %v129_v14 = vsub.f32 %v124_v11, %v128_v13 }
 0x197   :  { %v130_v15 = vmul.f32 1.442695, %v129_v14 }
 0x199   :  { %186 = vpow2.f32 %v130_v15 }
 0x1a3   :  { %v187_v16 = vpop.eup %186 }
 0x1a4   :  { %132 = vadd.xlane.f32.xlu0 %v187_v16 }
 0x231   :  { %v133_v17 = vpop.xlane.xlu0 %132 }
 0x232   :  { %188 = vrcp.f32 %v133_v17 }
 0x23c   :  { %v189_v18 = vpop.eup %188 }
 0x23d   :  { %v135_v19 = vmul.f32 %v189_v18, %v187_v16 }
 0x23f   :  { %137 = vst.msk [vmem:[#allocation7] sm:$0xff] %vm136_vm2, %v135_v19 }
 0x240   :  { %245 = shalt.err (!%p242_p6)
}
 0x241   :  { %s246_s15 = scalar_lea.hbm %s339_s3, 128 }
 0x242   :  { %p247_p7 = scmp.ne.s32.totalorder %s339_s3, %s246_s15  ;;  %p250_p8 = scmp.lt.u32.totalorder %s246_s15, %s339_s3 }
 0x244   :  { %p252_p9 = pnand %p250_p8, %p247_p7 }
 0x246   :  { %255 = shalt.err (!%p252_p9)
}
 0x247   :  { %147 = dma.vmem_to_hbm [thread:$0]  %s145_s12, 128, %s339_s3, [#allocation4]  }
 0x248   :  { %260 = dma.done.wait [#allocation4], 128  }
 0x249   :  { %261 = vsyncadd [#allocation4], 4294967168 }
 0x24a   :  { %151 = vsyncpa [#allocation3], 1 }
 0x24b   :  { %152 = vsyncpa [#allocation6], 1 }
 0x24c   :  { %153 = vsyncpa [#allocation4], 1 }

</bundles_post_ra>
